<compile_context>
chip_gen: v5e
topology: v5e:2x2
jax: 0.10.0
libtpu: 0.0.40
codegen_flags: <defaults>
</compile_context>

<pallas_src>
import functools
import math

import jax
import jax.numpy as jnp
from jax.experimental import pallas as pl
from jax.experimental.pallas import tpu as pltpu


def _make_kernel(kernel_size, dilation, row_block, t_tile, num_t_blocks):
    """Fused TemporalBlock forward for fixed (static) hyper-parameters/tile shapes."""
    K = kernel_size
    H = (K - 1) * dilation  # causal halo / left zero-padding width

    def kernel(x_ref, p_ref, o_ref, hx_ref):
        # hx_ref (f32) layout: [ halo: H stream columns left of this tile | current x tile ]
        if H > 0:
            if num_t_blocks > 1:
                @pl.when(pl.program_id(1) == 0)
                def _init_halo():
                    hx_ref[:, :H] = jnp.zeros((row_block, H), jnp.float32)
            else:
                hx_ref[:, :H] = jnp.zeros((row_block, H), jnp.float32)

        x = x_ref[...].astype(jnp.float32)                 # (row_block, t_tile)
        hx_ref[:, H:] = x

        p = p_ref[...].astype(jnp.float32)                 # (row_block, K + 2) param slab
        w = p[:, :K]                                       # depthwise conv taps
        b = p[:, K:K + 1]                                  # conv bias
        a = p[:, K + 1:K + 2]                              # PReLU slope

        # causal dilated depthwise conv (== Conv1d(groups=N) + Chomp1d):
        #   conv[c, t] = b[c] + sum_k w[c, k] * stream[c, t - (K-1-k)*dilation]
        acc = jnp.broadcast_to(b, (row_block, t_tile))     # bias broadcast, once
        for k in range(K):
            s = (K - 1 - k) * dilation
            tap = hx_ref[:, H - s:H - s + t_tile]          # static shifted slice (VMEM load)
            acc = acc + w[:, k:k + 1] * tap

        # residual + per-channel PReLU: prelu(conv_out + x)
        z = acc + x
        o_ref[...] = jnp.where(z > 0.0, z, a * z).astype(o_ref.dtype)

        # carry the last H stream columns into the halo for the next time tile
        if H > 0 and num_t_blocks > 1:
            hx_ref[:, :H] = hx_ref[:, t_tile:t_tile + H]

    return kernel


def _choose_tiling(B, N, T, block_bytes=2 << 20, max_block_bytes=4 << 20):
    """Pick (row_block, t_tile) obeying the (8,128)-divisible-OR-full-dim rule while
    targeting ~block_bytes of f32 per block (capped so double-buffered in+out fits v7x)."""
    rows = B * N
    slab = N * T * 4                       # one batch element, full time, f32
    m = 8 // math.gcd(N, 8)                # smallest batch chunk keeping (chunk*N) % 8 == 0

    if slab <= max_block_bytes:
        want = max(1, min(B, block_bytes // max(slab, 1)))
        if want >= B:
            return rows, T                 # full row dim: always legal
        b_chunk = max(m, (want // m) * m)
        if b_chunk >= B:
            return rows, T
        if b_chunk * slab <= max_block_bytes:
            return b_chunk * N, T          # (b_chunk*N) % 8 == 0, full time dim

    # Long sequences: time tiling with lane-dense (multiple of 128) tiles + halo carry.
    row_block = N if N % 8 == 0 else rows
    t_tile = max(128, (max_block_bytes // (row_block * 4)) // 128 * 128)
    if t_tile >= T:
        t_tile = T                         # full time dim: always legal
    return row_block, t_tile


@functools.partial(jax.jit, static_argnames=("kernel_size", "dilation"))
def temporal_block_forward(x, conv_w, conv_b, alpha, *, kernel_size, dilation):
    """TemporalBlock.forward (stride=1, padding=(kernel_size-1)*dilation, groups=N).

    x:      (B, N, T) float32 or bfloat16 (Conv1d layout: batch, channels, time)
    conv_w: (N, K)    depthwise Conv1d weight (PyTorch (N, 1, K) squeezed)
    conv_b: (N,)      Conv1d bias
    alpha:  (N,)      PReLU per-channel slope
    returns (B, N, T), same dtype as x
    """
    B, N, T = x.shape
    K = kernel_size
    H = (K - 1) * dilation

    row_block, t_tile = _choose_tiling(B, N, T)
    rows = B * N
    num_row_blocks = pl.cdiv(rows, row_block)
    num_t_blocks = pl.cdiv(T, t_tile)

    # (B, N, T) -> (B*N, T): a free (bitcast) reshape — no pad, no extra HBM copy, no slice.
    x2 = x.reshape(rows, T)

    # Pack per-channel parameters into one slab [w_0 .. w_{K-1} | bias | alpha] and replicate
    # to the block's rows (row blocks always start at multiples of N).
    slab = jnp.concatenate(
        [conv_w.astype(jnp.float32),
         conv_b.astype(jnp.float32)[:, None],
         alpha.astype(jnp.float32)[:, None]], axis=1)       # (N, K+2)
    slab = jnp.tile(slab, (row_block // N, 1))               # (row_block, K+2)

    kernel = _make_kernel(K, dilation, row_block, t_tile, num_t_blocks)

    out2 = pl.pallas_call(
        kernel,
        out_shape=jax.ShapeDtypeStruct((rows, T), x.dtype),
        grid_spec=pltpu.PrefetchScalarGridSpec(
            num_scalar_prefetch=0,
            grid=(num_row_blocks, num_t_blocks),
            in_specs=[
                pl.BlockSpec((row_block, t_tile), lambda i, j: (i, j)),   # x rows/time tile
                pl.BlockSpec((row_block, K + 2), lambda i, j: (0, 0)),    # packed param slab
            ],
            out_specs=pl.BlockSpec((row_block, t_tile), lambda i, j: (i, j)),
            scratch_shapes=[pltpu.VMEM((row_block, H + t_tile), jnp.float32)],
        ),
        compiler_params=pltpu.CompilerParams(
            dimension_semantics=("parallel", "arbitrary"),
            vmem_limit_bytes=48 * 1024 * 1024,
        ),
    )(x2, slab)
    return out2.reshape(B, N, T)


def temporal_block_ref(x, conv_w, conv_b, alpha, *, kernel_size, dilation):
    """Pure-JAX reference mirroring the PyTorch module (pad / conv / chomp / residual / PReLU)."""
    B, N, T = x.shape
    pad = (kernel_size - 1) * dilation
    xp = jnp.pad(x, ((0, 0), (0, 0), (pad, 0)))
    conv = jnp.zeros_like(x) + conv_b[None, :, None]
    for k in range(kernel_size):
        conv = conv + conv_w[None, :, k, None] * xp[:, :, k * dilation:k * dilation + T]
    z = conv + x
    return jnp.where(z > 0.0, z, alpha[None, :, None] * z)


if __name__ == "__main__":
    B, N, T = 2, 8, 16
    kernel_size, dilation = 2, 2          # stride=1, padding=(K-1)*dilation=2 (causal config)

    key = jax.random.PRNGKey(0)
    k_x, k_w, k_b, _ = jax.random.split(key, 4)
    x = jax.random.normal(k_x, (B, N, T), jnp.float32)
    conv_w = 0.1 * jax.random.normal(k_w, (N, kernel_size), jnp.float32)   # weight.normal_(0, 0.1)
    conv_b = 0.1 * jax.random.normal(k_b, (N,), jnp.float32)
    alpha = 0.25 * jnp.ones((N,), jnp.float32)                             # nn.PReLU default slope

    out = temporal_block_forward(x, conv_w, conv_b, alpha,
                                 kernel_size=kernel_size, dilation=dilation)
    out = jax.block_until_ready(out)

    ref = temporal_block_ref(x, conv_w, conv_b, alpha,
                             kernel_size=kernel_size, dilation=dilation)
    assert out.shape == (B, N, T)
    assert float(jnp.max(jnp.abs(out - ref))) < 1e-5, "kernel/reference mismatch"
    print("KERNEL_OK")
</pallas_src>

<mosaic_0001>
module attributes {stable_mosaic.version = 11 : i64} {
  func.func @kernel(%arg0: i32, %arg1: i32, %arg2: memref<16x16xf32, #tpu.memory_space<vmem>>, %arg3: memref<16x4xf32, #tpu.memory_space<vmem>>, %arg4: memref<16x16xf32, #tpu.memory_space<vmem>>, %arg5: memref<16x18xf32, #tpu.memory_space<vmem>>) attributes {dimension_semantics = [#tpu.dimension_semantics<parallel>, #tpu.dimension_semantics<arbitrary>], iteration_bounds = array<i64: 1, 1>, scalar_prefetch = 0 : i64, scratch_operands = 1 : i64, tpu.core_type = #tpu.core_type<tc>, window_params = [{transform_indices = @transform_0, window_bounds = array<i64: 16, 16>}, {pipeline_mode = #tpu.pipeline_mode<synchronous>, transform_indices = @transform_1, window_bounds = array<i64: 16, 4>}, {transform_indices = @transform_2, window_bounds = array<i64: 16, 16>}]} {
    %cst = arith.constant 0.000000e+00 : f32
    %0 = vector.broadcast %cst : f32 to vector<16x2xf32>
    %c0 = arith.constant 0 : index
    %c0_0 = arith.constant 0 : index
    %1 = vector.load %arg5[%c0, %c0_0] : memref<16x18xf32, #tpu.memory_space<vmem>>, vector<16x2xf32>
    tpu.vector_store %arg5[%c0, %c0_0], %0 {strides = array<i32>} : memref<16x18xf32, #tpu.memory_space<vmem>>, vector<16x2xf32>,
    %c0_1 = arith.constant 0 : index
    %c0_2 = arith.constant 0 : index
    %2 = vector.load %arg2[%c0_1, %c0_2] : memref<16x16xf32, #tpu.memory_space<vmem>>, vector<16x16xf32>
    %c0_3 = arith.constant 0 : index
    %c2 = arith.constant 2 : index
    %3 = vector.load %arg5[%c0_3, %c2] : memref<16x18xf32, #tpu.memory_space<vmem>>, vector<16x16xf32>
    tpu.vector_store %arg5[%c0_3, %c2], %2 {strides = array<i32>} : memref<16x18xf32, #tpu.memory_space<vmem>>, vector<16x16xf32>,
    %c0_4 = arith.constant 0 : index
    %c0_5 = arith.constant 0 : index
    %4 = vector.load %arg3[%c0_4, %c0_5] : memref<16x4xf32, #tpu.memory_space<vmem>>, vector<16x4xf32>
    %5 = vector.extract_strided_slice %4 {offsets = [0, 0], sizes = [16, 2], strides = [1, 1]} : vector<16x4xf32> to vector<16x2xf32>
    %6 = vector.extract_strided_slice %4 {offsets = [0, 2], sizes = [16, 1], strides = [1, 1]} : vector<16x4xf32> to vector<16x1xf32>
    %7 = vector.extract_strided_slice %4 {offsets = [0, 3], sizes = [16, 1], strides = [1, 1]} : vector<16x4xf32> to vector<16x1xf32>
    %8 = vector.shape_cast %6 : vector<16x1xf32> to vector<16x1xf32>
    %9 = vector.broadcast %8 : vector<16x1xf32> to vector<16x16xf32>
    %c0_6 = arith.constant 0 : index
    %c0_7 = arith.constant 0 : index
    %10 = vector.load %arg5[%c0_6, %c0_7] : memref<16x18xf32, #tpu.memory_space<vmem>>, vector<16x16xf32>
    %11 = vector.extract_strided_slice %5 {offsets = [0, 0], sizes = [16, 1], strides = [1, 1]} : vector<16x2xf32> to vector<16x1xf32>
    %12 = vector.broadcast %11 : vector<16x1xf32> to vector<16x16xf32>
    %13 = arith.mulf %12, %10 : vector<16x16xf32>
    %14 = arith.addf %9, %13 : vector<16x16xf32>
    %c0_8 = arith.constant 0 : index
    %c2_9 = arith.constant 2 : index
    %15 = vector.load %arg5[%c0_8, %c2_9] : memref<16x18xf32, #tpu.memory_space<vmem>>, vector<16x16xf32>
    %16 = vector.extract_strided_slice %5 {offsets = [0, 1], sizes = [16, 1], strides = [1, 1]} : vector<16x2xf32> to vector<16x1xf32>
    %17 = vector.broadcast %16 : vector<16x1xf32> to vector<16x16xf32>
    %18 = arith.mulf %17, %15 : vector<16x16xf32>
    %19 = arith.addf %14, %18 : vector<16x16xf32>
    %20 = arith.addf %19, %2 : vector<16x16xf32>
    %cst_10 = arith.constant 0.000000e+00 : f32
    %21 = vector.broadcast %cst_10 : f32 to vector<16x16xf32>
    %22 = arith.cmpf ogt, %20, %21 : vector<16x16xf32>
    %23 = vector.broadcast %7 : vector<16x1xf32> to vector<16x16xf32>
    %24 = arith.mulf %23, %20 : vector<16x16xf32>
    %25 = arith.select %22, %20, %24 : vector<16x16xi1>, vector<16x16xf32>
    %c0_11 = arith.constant 0 : index
    %c0_12 = arith.constant 0 : index
    %26 = vector.load %arg4[%c0_11, %c0_12] : memref<16x16xf32, #tpu.memory_space<vmem>>, vector<16x16xf32>
    tpu.vector_store %arg4[%c0_11, %c0_12], %25 {strides = array<i32>} : memref<16x16xf32, #tpu.memory_space<vmem>>, vector<16x16xf32>,
    return
  }
  func.func @transform_0(%arg0: i32, %arg1: i32) -> (i32, i32) {
    %c0_i32 = arith.constant 0 : i32
    return %arg0, %arg1 : i32, i32
  }
  func.func @transform_1(%arg0: i32, %arg1: i32) -> (i32, i32) {
    %c0_i32 = arith.constant 0 : i32
    %c0_i32_0 = arith.constant 0 : i32
    %c0_i32_1 = arith.constant 0 : i32
    return %c0_i32, %c0_i32_0 : i32, i32
  }
  func.func @transform_2(%arg0: i32, %arg1: i32) -> (i32, i32) {
    %c0_i32 = arith.constant 0 : i32
    return %arg0, %arg1 : i32, i32
  }
}

</mosaic_0001>

<bundles_post_ra>
// kernel: temporal_block_forward.1
= control target key start
LH: loop header
LB: loop body
LE: loop exit
PB: predicated region body
PF: predicated region fallthrough
CT: control target
= control target key end

     0   :  { %v153_v2 = vmov 1   ;;  %s154_s13 = smov 2   ;;  %s195_s0 = inlined_call_operand.vmem [shape: f32[16,16], index: 0, kind: input, shape index: {}]   ;;  %s196_s1 = inlined_call_operand.vmem [shape: f32[16,4], index: 1, kind: input, shape index: {}]   ;;  %s197_s2 = inlined_call_operand.hbm [shape: f32[16,16], index: 2, kind: output, shape index: {}]  }
   0x1   :  { %v15_v0 = vld [vmem:[%s195_s0] sm:$0xff]  ;;  %121 = vset.pattern.permute.xlu1 %v153_v2 }
   0x2   :  { %v28_v1 = vld [vmem:[%s196_s1] sm:$0xff]  ;;  %19 = vrot.lane.b32.xlu0 %v15_v0, %s154_s13 }
   0x3   :  { %7 = vsyncpa [#allocation4], 0  ;;  %55 = vperm.xlu1 %121, %v28_v1   ;;  %v155_v3 = vmov 2   ;;  %v156_v4 = vmov 0   ;;  %v16_v5 = vld [vmem:[%s195_s0 + $0x8] sm:$0xff]  ;;  %vm12_vm0 = vcmask 15360  }
   0x4   :  { %123 = vset.pattern.permute.xlu0 %v155_v3  ;;  %122 = vset.pattern.permute.xlu2 %v156_v4  ;;  %v29_v6 = vld [vmem:[%s196_s1 + $0x8] sm:$0xff]  ;;  %v157_v7 = vmov 0.0   ;;  %v158_v8 = vmov 3   ;;  %vm25_vm1 = vcmask 146448   ;;  %s159_s0 = smov 126   ;;  %vm90_vm2 = vcmask 130048  }
   0x5   :  { %43 = vperm.xlu2 %122, %v28_v1   ;;  %13 = vst.msk [vmem:[#allocation2] sm:$0xff] %vm12_vm0, %v157_v7  ;;  %s160_s1 = smov [#allocation3]   ;;  %s99_s21 = sshll.u32 %s197_s2, 4  ;;  %s100_s21 = int_to_ptr.hbm [resolvable:$true] %s99_s21 }
   0x6   :  { %14 = vst.msk [vmem:[#allocation2 + $0x8] sm:$0xff] %vm12_vm0, %v157_v7  ;;  %s97_s18 = sshll.u32 %s160_s1, 4  ;;  %s161_s22 = smov 128   ;;  %s98_s18 = int_to_ptr.vmem [resolvable:$true] %s97_s18 }
   0x7   :  { %s162_s23 = smov 8  }
   0xa   :  { %21 = vrot.lane.b32.xlu0 %v16_v5, %s154_s13 }
   0xb   :  { %59 = vperm.xlu1 %121, %v29_v6  }
   0xd   :  { %47 = vperm.xlu2 %122, %v29_v6  }
  0x12   :  { %32 = vperm.xlu0 %123, %v28_v1  }
  0x13   :  { %124 = vset.pattern.permute.xlu1 %v155_v3 }
  0x14   :  { %37 = vperm.xlu1 %124, %v29_v6  }
  0x15   :  { %125 = vset.pattern.permute.xlu2 %v158_v8 }
  0x1a   :  { %126 = vset.pattern.permute.xlu0 %v158_v8 }
  0x1b   :  { %83 = vperm.xlu0 %126, %v29_v6  }
  0x5f   :  { %v44_v17 = vpop.permute.xlu2 %43 }
  0x67   :  { %v48_v18 = vpop.permute.xlu2 %47 }
  0x74   :  { %v20_v9 = vpop.permute.xlu0 %19 }
  0x75   :  { %26 = vst.msk [vmem:[#allocation2] sm:$0xff] %vm25_vm1, %v20_v9  ;;  %v56_v10 = vpop.permute.xlu1 %55 }
  0x7c   :  { %v40_v11 = vld [vmem:[#allocation2] sm:$0xff]  ;;  %v22_v12 = vpop.permute.xlu0 %21 }
  0x7d   :  { %v62_v13 = vmul.f32 %v56_v10, %v40_v11  ;;  %27 = vst.msk [vmem:[#allocation2 + $0x8] sm:$0xff] %vm25_vm1, %v22_v12  ;;  %v60_v14 = vpop.permute.xlu1 %59  ;;  %v50_v20 = vmul.f32 %v44_v17, %v40_v11 }
  0x7f   :  { %66 = vrot.lane.b32.xlu2 %v62_v13, %s159_s0 }
  0x84   :  { %v41_v15 = vld [vmem:[#allocation2 + $0x8] sm:$0xff]  ;;  %v33_v19 = vpop.permute.xlu0 %32 }
  0x85   :  { %v63_v16 = vmul.f32 %v60_v14, %v41_v15  ;;  %v52_v21 = vadd.f32 %v50_v20, %v33_v19  ;;  %v51_v29 = vmul.f32 %v48_v18, %v41_v15 }
  0x86   :  { %v38_v28 = vpop.permute.xlu1 %37 }
  0x87   :  { %68 = vrot.lane.b32.xlu1 %v63_v16, %s159_s0  ;;  %79 = vperm.xlu2 %125, %v28_v1   ;;  %v53_v30 = vadd.f32 %v51_v29, %v38_v28 }
  0x8d   :  { %v84_v33 = vpop.permute.xlu0 %83 }
  0xd9   :  { %v67_v22 = vpop.permute.xlu2 %66 }
  0xda   :  { %v72_v23 = vadd.f32 %v67_v22, %v52_v21 }
  0xdc   :  { %v74_v24 = vadd.f32 %v72_v23, %v15_v0 }
  0xde   :  { %vm76_vm3 = vcmp.gt.f32.partialorder %v74_v24, 0.0 }
  0xe1   :  { %v80_v25 = vpop.permute.xlu2 %79 }
  0xe2   :  { %v86_v26 = vmul.f32 %v80_v25, %v74_v24 }
  0xe4   :  { %v88_v27 = vsel %vm76_vm3, %v74_v24, %v86_v26 }
  0xe5   :  { %91 = vst.msk [vmem:[#allocation3] sm:$0xff] %vm90_vm2, %v88_v27 }
  0xf9   :  { %v69_v31 = vpop.permute.xlu1 %68 }
  0xfa   :  { %v73_v32 = vadd.f32 %v69_v31, %v53_v30 }
  0xfc   :  { %v75_v34 = vadd.f32 %v73_v32, %v16_v5 }
  0xfe   :  { %vm77_vm4 = vcmp.gt.f32.partialorder %v75_v34, 0.0  ;;  %v87_v35 = vmul.f32 %v84_v33, %v75_v34 }
 0x100   :  { %v89_v36 = vsel %vm77_vm4, %v75_v34, %v87_v35 }
 0x101   :  { %92 = vst.msk [vmem:[#allocation3 + $0x8] sm:$0xff] %vm90_vm2, %v89_v36 }
 0x102   :  { %105 = dma.vmem_to_hbm [thread:$0]  %s98_s18, 256, %s100_s21, [#allocation4], %s161_s22, %s161_s22, %s162_s23  }
 0x103   :  { %151 = dma.done.wait [#allocation4], 256  }
 0x104   :  { %152 = vsyncadd [#allocation4], 4294967040 }
 0x105   :  { %110 = vsyncpa [#allocation4], 1 }

</bundles_post_ra>
